<compile_context>
chip_gen: v6e
topology: v6e:2x2x1
jax: 0.10.0
libtpu: 0.0.40
codegen_flags: <defaults>
</compile_context>

<pallas_src>
import jax
import jax.numpy as jnp
from jax.experimental import pallas as pl
from jax.experimental.pallas import tpu as pltpu


def _center_loss_kernel(x_ref, csel_ref, out_ref):
    """Per-row clamped squared distance to the (pre-gathered) label center.

    x_ref:    (TB, D) features in storage dtype (f32 or bf16)
    csel_ref: (TB, D) centers[labels] rows in storage dtype
    out_ref:  (TB, 1) f32: clamp(||x_i - c_i||^2, 1e-12, 1e12)
    """
    x = x_ref[...].astype(jnp.float32)
    c = csel_ref[...].astype(jnp.float32)
    diff = x - c
    d = jnp.sum(diff * diff, axis=1, keepdims=True)      # (TB, 1)
    out_ref[...] = jnp.clip(d, 1e-12, 1e12)


def center_loss(x, labels, centers, *, tile_b=512, core_parallel=False):
    """CenterLoss forward.

    x:       (B, D) feature matrix (f32 or bf16)
    labels:  (B,)   integer class ids in [0, C)
    centers: (C, D) class centers

    Returns scalar f32: mean_i clamp(||x_i - centers[labels_i]||^2, 1e-12, 1e12).
    """
    B, D = x.shape
    C, Dc = centers.shape
    assert D == Dc, (D, Dc)

    # Gather the label's center row in the wrapper: only one of the C rows is
    # needed per sample, so this keeps kernel HBM traffic at O(B*D) regardless
    # of C and removes the resident (C, D) centers block entirely.
    # Note: XLA clamps out-of-range indices instead of raising like PyTorch.
    centers_sel = jnp.take(centers, labels.astype(jnp.int32), axis=0)  # (B, D)

    # Batch tile: sublane-aligned, large enough to amortize per-step pipeline
    # overhead, auto-shrunk so double-buffered input tiles stay within ~8 MiB.
    if B <= tile_b:
        tb = B                                    # single block == full array
    else:
        bytes_per_row = D * (x.dtype.itemsize + centers.dtype.itemsize)
        tb_cap = max(8, ((8 << 20) // (2 * bytes_per_row)) // 8 * 8)
        tb = max(8, min((tile_b // 8) * 8, tb_cap))
    num_tiles = pl.cdiv(B, tb)                    # no input padding for ragged B

    # Explicit scoped-VMEM budget: 2x-buffered input tiles + in-kernel f32
    # temporaries + 2x-buffered (tb, 1) output tiles, with 2x headroom.
    tile_in_bytes = tb * D * (x.dtype.itemsize + centers.dtype.itemsize)
    footprint = 2 * tile_in_bytes + 4 * tb * D * 4 + 2 * tb * 4
    vmem_limit = int(min(max(2 * footprint, 8 << 20), 48 << 20))

    # On v7x, pass core_parallel=True (pltpu.CORE_PARALLEL) to shard the batch
    # grid across both TensorCores; default stays portable across generations.
    sem = (pltpu.CORE_PARALLEL,) if core_parallel else ("parallel",)

    per_row = pl.pallas_call(
        _center_loss_kernel,
        out_shape=jax.ShapeDtypeStruct((B, 1), jnp.float32),
        grid=(num_tiles,),
        in_specs=[
            pl.BlockSpec((tb, D), lambda i: (i, 0)),   # x tile (pipelined)
            pl.BlockSpec((tb, D), lambda i: (i, 0)),   # gathered centers tile
        ],
        out_specs=pl.BlockSpec((tb, 1), lambda i: (i, 0)),
        compiler_params=pltpu.CompilerParams(
            dimension_semantics=sem,
            vmem_limit_bytes=vmem_limit),
    )(x, centers_sel)

    # Tiny epilogue: mean of the B per-sample clamped distances.
    return jnp.sum(per_row[:, 0]) / jnp.float32(B)


def _reference(x, labels, centers):
    x = x.astype(jnp.float32)
    centers = centers.astype(jnp.float32)
    distmat = (jnp.sum(x ** 2, axis=1, keepdims=True)
               + jnp.sum(centers ** 2, axis=1)[None, :]
               - 2.0 * (x @ centers.T))
    d = jnp.take_along_axis(distmat, labels.astype(jnp.int32)[:, None], axis=1)[:, 0]
    return jnp.mean(jnp.clip(d, 1e-12, 1e12))


if __name__ == "__main__":
    num_classes = 10
    feat_dim = 32
    batch = 8

    key = jax.random.PRNGKey(0)
    kx, kl, kc = jax.random.split(key, 3)
    x = jax.random.normal(kx, (batch, feat_dim), dtype=jnp.float32)
    labels = jax.random.randint(kl, (batch,), 0, num_classes, dtype=jnp.int32)
    # TODO(synk): `centers` is an nn.Parameter (learnable, randn-init) in the
    # PyTorch module; here it is supplied as an explicit input array.
    centers = jax.random.normal(kc, (num_classes, feat_dim), dtype=jnp.float32)

    loss = jax.block_until_ready(center_loss(x, labels, centers))
    ref = _reference(x, labels, centers)
    assert jnp.allclose(loss, ref, atol=1e-4, rtol=1e-4), (loss, ref)

    # Multi-tile grid with a ragged boundary block (20 % 8 != 0): exercises the
    # no-pad remainder path (masked boundary writeback, no jnp.pad of x).
    batch2 = 20
    x2 = jax.random.normal(kx, (batch2, feat_dim), dtype=jnp.float32)
    labels2 = jax.random.randint(kl, (batch2,), 0, num_classes, dtype=jnp.int32)
    loss2 = jax.block_until_ready(center_loss(x2, labels2, centers, tile_b=8))
    ref2 = _reference(x2, labels2, centers)
    assert jnp.allclose(loss2, ref2, atol=1e-4, rtol=1e-4), (loss2, ref2)

    # bf16 storage-dtype path: HBM traffic stays bf16, upcast happens in-kernel.
    x3 = x.astype(jnp.bfloat16)
    c3 = centers.astype(jnp.bfloat16)
    loss3 = jax.block_until_ready(center_loss(x3, labels, c3))
    ref3 = _reference(x3, labels, c3)
    assert jnp.allclose(loss3, ref3, atol=2e-2, rtol=2e-2), (loss3, ref3)

    print("KERNEL_OK")
</pallas_src>

<mosaic_0001>
module attributes {stable_mosaic.version = 11 : i64} {
  func.func @_center_loss_kernel(%arg0: i32, %arg1: memref<8x32xf32, #tpu.memory_space<vmem>>, %arg2: memref<8x32xf32, #tpu.memory_space<vmem>>, %arg3: memref<8x1xf32, #tpu.memory_space<vmem>>) attributes {dimension_semantics = [#tpu.dimension_semantics<parallel>], iteration_bounds = array<i64: 1>, scalar_prefetch = 0 : i64, scratch_operands = 0 : i64, tpu.core_type = #tpu.core_type<tc>, window_params = [{transform_indices = @transform_0, window_bounds = array<i64: 8, 32>}, {transform_indices = @transform_1, window_bounds = array<i64: 8, 32>}, {transform_indices = @transform_2, window_bounds = array<i64: 8, 1>}]} {
    %c0 = arith.constant 0 : index
    %c0_0 = arith.constant 0 : index
    %0 = vector.load %arg1[%c0, %c0_0] : memref<8x32xf32, #tpu.memory_space<vmem>>, vector<8x32xf32>
    %c0_1 = arith.constant 0 : index
    %c0_2 = arith.constant 0 : index
    %1 = vector.load %arg2[%c0_1, %c0_2] : memref<8x32xf32, #tpu.memory_space<vmem>>, vector<8x32xf32>
    %2 = arith.subf %0, %1 : vector<8x32xf32>
    %3 = arith.mulf %2, %2 : vector<8x32xf32>
    %cst = arith.constant dense<0.000000e+00> : vector<8xf32>
    %4 = vector.multi_reduction <add>, %3, %cst [1] : vector<8x32xf32> to vector<8xf32>
    %5 = vector.shape_cast %4 : vector<8xf32> to vector<8x1xf32>
    %cst_3 = arith.constant 9.99999996E-13 : f32
    %cst_4 = arith.constant 9.99999995E+11 : f32
    %6 = vector.broadcast %cst_3 : f32 to vector<8x1xf32>
    %7 = arith.maximumf %6, %5 : vector<8x1xf32>
    %8 = vector.broadcast %cst_4 : f32 to vector<8x1xf32>
    %9 = arith.minimumf %8, %7 : vector<8x1xf32>
    %c0_5 = arith.constant 0 : index
    %c0_6 = arith.constant 0 : index
    %10 = vector.load %arg3[%c0_5, %c0_6] : memref<8x1xf32, #tpu.memory_space<vmem>>, vector<8x1xf32>
    tpu.vector_store %arg3[%c0_5, %c0_6], %9 {strides = array<i32>} : memref<8x1xf32, #tpu.memory_space<vmem>>, vector<8x1xf32>,
    return
  }
  func.func @transform_0(%arg0: i32) -> (i32, i32) {
    %c0_i32 = arith.constant 0 : i32
    %c0_i32_0 = arith.constant 0 : i32
    return %arg0, %c0_i32 : i32, i32
  }
  func.func @transform_1(%arg0: i32) -> (i32, i32) {
    %c0_i32 = arith.constant 0 : i32
    %c0_i32_0 = arith.constant 0 : i32
    return %arg0, %c0_i32 : i32, i32
  }
  func.func @transform_2(%arg0: i32) -> (i32, i32) {
    %c0_i32 = arith.constant 0 : i32
    %c0_i32_0 = arith.constant 0 : i32
    return %arg0, %c0_i32 : i32, i32
  }
}

</mosaic_0001>

<bundles_post_ra>
// kernel: tpu_custom_call.1
= control target key start
LH: loop header
LB: loop body
LE: loop exit
PB: predicated region body
PF: predicated region fallthrough
CT: control target
= control target key end

     0   :  { %7 = vsyncpa [#allocation3], 0  ;;  %s125_s0 = inlined_call_operand.hbm [shape: f32[8,32], index: 0, kind: input, shape index: {}]   ;;  %s126_s1 = inlined_call_operand.hbm [shape: f32[8,32], index: 1, kind: input, shape index: {}]   ;;  %s127_s2 = inlined_call_operand.vmem [shape: f32[8,1], index: 2, kind: output, shape index: {}]  }
   0x1   :  { %8 = vsyncpa [#allocation5], 0  ;;  %s99_s9 = smov [#allocation2]   ;;  %s100_s11 = smov [#allocation4]  }
   0x2   :  { %s15_s10 = sshll.u32 %s99_s9, 4  ;;  %s25_s12 = sshll.u32 %s100_s11, 4  ;;  %s16_s10 = int_to_ptr.vmem [resolvable:$true] %s15_s10  ;;  %s26_s12 = int_to_ptr.vmem [resolvable:$true] %s25_s12 }
   0x3   :  { %s63_s13 = scalar_lea.vmem %s16_s10, 128  ;;  %p68_p1 = scmp.lt.s32.totalorder %s16_s10, %s16_s10 }
   0x4   :  { %p64_p0 = scmp.ne.s32.totalorder %s16_s10, %s63_s13  ;;  %p69_p2 = scmp.lt.s32.totalorder %s63_s13, %s63_s13 }
   0x6   :  { %p70_p3 = por %p69_p2, %p68_p1 }
   0x8   :  { %p71_p4 = pnand %p70_p3, %p64_p0 }
   0xa   :  { %74 = shalt.err (!%p71_p4)
}
   0xb   :  { %18 = dma.hbm_to_vmem [thread:$0]  %s125_s0, 128, %s16_s10, [#allocation3]  }
   0xc   :  { %s83_s16 = scalar_lea.vmem %s26_s12, 128  ;;  %p88_p6 = scmp.lt.s32.totalorder %s26_s12, %s26_s12 }
   0xd   :  { %p84_p5 = scmp.ne.s32.totalorder %s26_s12, %s83_s16  ;;  %p89_p7 = scmp.lt.s32.totalorder %s83_s16, %s83_s16 }
   0xf   :  { %p90_p8 = por %p89_p7, %p88_p6 }
  0x11   :  { %p91_p9 = pnand %p90_p8, %p84_p5 }
  0x13   :  { %94 = shalt.err (!%p91_p9)
}
  0x14   :  { %28 = dma.hbm_to_vmem [thread:$0]  %s126_s1, 128, %s26_s12, [#allocation5]  }
  0x15   :  { %95 = dma.done.wait [#allocation3], 128  }
  0x16   :  { %96 = vsyncadd [#allocation3], 4294967168 }
  0x17   :  { %97 = dma.done.wait [#allocation5], 128  }
  0x18   :  { %98 = vsyncadd [#allocation5], 4294967168  ;;  %v35_v0 = vld [vmem:[#allocation2] sm:$0xff]  ;;  %v36_v1 = vld [vmem:[#allocation4] sm:$0xff]  ;;  %vm39_vm0 = vcmask 261120   ;;  %vm45_vm1 = vcmask 7168  }
  0x19   :  { %v37_v2 = vsub.f32 %v35_v0, %v36_v1 }
  0x1b   :  { %v38_v3 = vmul.f32 %v37_v2, %v37_v2 }
  0x1d   :  { %v40_v4 = vsel %vm39_vm0, %v38_v3, 0.0 }
  0x1e   :  { %41 = vadd.xlane.f32.xlu0 %v40_v4 }
  0xa7   :  { %v42_v5 = vpop.xlane.xlu0 %41 }
  0xa8   :  { %v43_v6 = vmax.f32 %v42_v5, 1e-12 }
  0xaa   :  { %v44_v7 = vmin.f32 %v43_v6, 1e+12 }
  0xac   :  { %46 = vst.msk [vmem:[%s127_s2] sm:$0xff] %vm45_vm1, %v44_v7 }
  0xad   :  { %51 = vsyncpa [#allocation3], 1 }
  0xae   :  { %52 = vsyncpa [#allocation5], 1 }

</bundles_post_ra>
